<compile_context>
chip_gen: v5e
topology: v5e:2x2
jax: 0.10.0
libtpu: 0.0.40
codegen_flags: <defaults>
</compile_context>

<pallas_src>
import functools

import jax
import jax.numpy as jnp
from jax.experimental import pallas as pl
from jax.experimental.pallas import tpu as pltpu


def _outconv_kernel(x_ref, w_ref, b_ref, o_ref):
    # x_ref: (C_in, T), w_ref: (tco, C_in), b_ref: (tco, 1), o_ref: (tco, T)
    acc = jnp.dot(w_ref[...], x_ref[...], preferred_element_type=jnp.float32)
    o_ref[...] = (acc + b_ref[...]).astype(o_ref.dtype)


def _vmem_capacity_bytes():
    """Physical VMEM of the attached TPU; conservative fallback (v7x) if the
    query is unavailable."""
    try:
        return int(pltpu.get_tpu_info().vmem_capacity_bytes)
    except Exception:
        return 64 * 1024 * 1024


def _pick_tiles(N, C_in, C_out, HW, itemsize):
    """Pick (hw_tile, c_out_tile, vmem_limit_bytes) from a generation-aware
    VMEM budget so every grid step moves as many bytes as safely possible."""
    capacity = _vmem_capacity_bytes()
    budget = int(0.70 * capacity)       # ~45 MiB on v7x, ~90 MiB on v5e/v6e
    vmem_limit = int(0.75 * capacity)   # scoped limit handed to Mosaic

    # C_out tile: keep the (double-buffered) weight block to <= ~budget/4.
    w_row_bytes = 2 * C_in * itemsize
    max_rows = max(8, (budget // 4) // max(w_row_bytes, 1))
    tco = C_out if C_out <= max_rows else max(8, (max_rows // 8) * 8)

    # Bytes resident per spatial column: x + out blocks (double-buffered) plus
    # a fudge for the compiler's f32 matmul accumulator.
    resident = 2 * tco * (C_in + 1) * itemsize            # weight + bias blocks
    per_col = 2 * (C_in + tco) * itemsize + 4 * tco
    col_budget = max(budget - resident, 128 * per_col)
    cap = max(128, min(32768, ((col_budget // per_col) // 128) * 128))

    if HW % 128 == 0:
        hw_tile = min(HW, cap)
    elif HW * per_col <= col_budget:
        hw_tile = HW                    # full-dim last block: always legal
    else:
        hw_tile = cap                   # multiple of 128; ragged tail is masked

    # Keep >= ~8 grid steps so v7x's two TensorCores both get work and input
    # DMA still overlaps compute (harmless on v5e/v6e).
    min_steps = 8
    n_co = -(-C_out // tco)
    n_hw = -(-HW // hw_tile)
    if hw_tile > 128 and N * n_co * n_hw < min_steps:
        want_hw_steps = -(-min_steps // max(N * n_co, 1))
        alt = max(128, ((HW // want_hw_steps) // 128) * 128)
        hw_tile = max(128, min(hw_tile, alt))

    return int(hw_tile), int(tco), int(vmem_limit)


@functools.partial(jax.jit, static_argnums=(3, 4, 5))
def _out_conv_call(x3, w2, b2, hw_tile, tco, vmem_limit):
    N, C_in, HW = x3.shape
    C_out = w2.shape[0]
    itemsize = x3.dtype.itemsize

    grid = (N, pl.cdiv(C_out, tco), pl.cdiv(HW, hw_tile))

    cost = pl.CostEstimate(
        flops=2 * N * C_out * C_in * HW,
        transcendentals=0,
        bytes_accessed=(N * C_in * HW + C_out * C_in + C_out
                        + N * C_out * HW) * itemsize,
    )

    # TODO(synk): for very large C_in add a K-reduction grid axis with an f32
    # VMEM accumulator; C_in is kept untiled here since OutConv channel counts
    # comfortably fit VMEM.
    # TODO(synk): pipeline_mode=pl.Buffered(1) on the constant weight/bias
    # blocks would free their second buffer; left at the default and accounted
    # for in the VMEM budget instead.
    return pl.pallas_call(
        _outconv_kernel,
        out_shape=jax.ShapeDtypeStruct((N, C_out, HW), x3.dtype),
        grid_spec=pltpu.PrefetchScalarGridSpec(
            num_scalar_prefetch=0,
            grid=grid,
            in_specs=[
                pl.BlockSpec((None, C_in, hw_tile), lambda n, co, j: (n, 0, j)),
                pl.BlockSpec((tco, C_in), lambda n, co, j: (co, 0)),
                pl.BlockSpec((tco, 1), lambda n, co, j: (co, 0)),
            ],
            out_specs=pl.BlockSpec((None, tco, hw_tile),
                                   lambda n, co, j: (n, co, j)),
        ),
        compiler_params=pltpu.CompilerParams(
            # All three axes are independent -> Mosaic can shard across v7x's
            # two TensorCores; neutral on v5e/v6e.
            dimension_semantics=("parallel", "parallel", "parallel"),
            vmem_limit_bytes=vmem_limit,
        ),
        cost_estimate=cost,
    )(x3, w2, b2)


def out_conv(x, weight, bias, *, hw_tile=None):
    """Equivalent of nn.Conv2d(in_channels, out_channels, kernel_size=1)(x).

    x:      (N, C_in, H, W)   -- NCHW, like PyTorch
    weight: (C_out, C_in, 1, 1)
    bias:   (C_out,)
    returns (N, C_out, H, W)
    """
    N, C_in, H, W = x.shape
    C_out = weight.shape[0]
    HW = H * W

    # Free reshapes -- no transposes, no extra HBM traffic.
    x3 = x.reshape(N, C_in, HW)          # (N, C_in, HW)
    w2 = weight.reshape(C_out, C_in)     # (C_out, C_in)
    b2 = bias.reshape(C_out, 1)          # (C_out, 1)

    itemsize = jnp.dtype(x.dtype).itemsize
    auto_hw, tco, vmem_limit = _pick_tiles(N, C_in, C_out, HW, itemsize)
    if hw_tile is None:
        hw_tile = auto_hw

    out3 = _out_conv_call(x3, w2, b2, int(hw_tile), int(tco), int(vmem_limit))
    return out3.reshape(N, C_out, H, W)


def init_outconv_params(key, in_channels, out_channels, dtype=jnp.float32):
    """Deterministic parameter init (uniform, roughly matching PyTorch's
    kaiming-uniform fan-in bound for a 1x1 conv)."""
    kw, kb = jax.random.split(key)
    fan_in = in_channels * 1 * 1
    bound = 1.0 / jnp.sqrt(fan_in)
    weight = jax.random.uniform(
        kw, (out_channels, in_channels, 1, 1), dtype, -bound, bound)
    bias = jax.random.uniform(kb, (out_channels,), dtype, -bound, bound)
    return weight, bias


if __name__ == "__main__":
    key = jax.random.PRNGKey(0)
    k_x, k_p = jax.random.split(key)

    N, C_in, H, W = 2, 4, 16, 16
    C_out = 3

    x = jax.random.normal(k_x, (N, C_in, H, W), jnp.float32)
    weight, bias = init_outconv_params(k_p, C_in, C_out)

    out = out_conv(x, weight, bias)
    out = jax.block_until_ready(out)

    # Reference check with plain JAX (1x1 conv == channel matmul + bias).
    ref = jnp.einsum("nchw,oc->nohw", x, weight.reshape(C_out, C_in)) \
        + bias.reshape(1, C_out, 1, 1)
    assert out.shape == (N, C_out, H, W)
    assert jnp.allclose(out, ref, atol=1e-5, rtol=1e-5)

    print("KERNEL_OK")
</pallas_src>

<mosaic_0001>
module attributes {stable_mosaic.version = 11 : i64} {
  func.func @_outconv_kernel(%arg0: i32, %arg1: i32, %arg2: i32, %arg3: memref<1x4x128xf32, #tpu.memory_space<vmem>>, %arg4: memref<3x4xf32, #tpu.memory_space<vmem>>, %arg5: memref<3x1xf32, #tpu.memory_space<vmem>>, %arg6: memref<1x3x128xf32, #tpu.memory_space<vmem>>) attributes {dimension_semantics = [#tpu.dimension_semantics<parallel>, #tpu.dimension_semantics<parallel>, #tpu.dimension_semantics<parallel>], iteration_bounds = array<i64: 2, 1, 2>, scalar_prefetch = 0 : i64, scratch_operands = 0 : i64, tpu.core_type = #tpu.core_type<tc>, window_params = [{transform_indices = @transform_0, window_bounds = array<i64: 1, 4, 128>}, {transform_indices = @transform_1, window_bounds = array<i64: 3, 4>}, {transform_indices = @transform_2, window_bounds = array<i64: 3, 1>}, {transform_indices = @transform_3, window_bounds = array<i64: 1, 3, 128>}]} {
    %c0 = arith.constant 0 : index
    %c0_0 = arith.constant 0 : index
    %0 = vector.load %arg4[%c0, %c0_0] : memref<3x4xf32, #tpu.memory_space<vmem>>, vector<3x4xf32>
    %c0_1 = arith.constant 0 : index
    %c0_2 = arith.constant 0 : index
    %c0_3 = arith.constant 0 : index
    %1 = vector.load %arg3[%c0_1, %c0_2, %c0_3] : memref<1x4x128xf32, #tpu.memory_space<vmem>>, vector<1x4x128xf32>
    %2 = vector.shape_cast %1 : vector<1x4x128xf32> to vector<4x128xf32>
    %cst = arith.constant dense<0.000000e+00> : vector<3x128xf32>
    %3 = tpu.matmul %0, %2, %cst {dimension_numbers = #tpu.dot_dimension_numbers<[1], [0], [0], [1], [0, 0, 1, 1], [], []>} : vector<3x4xf32>, vector<4x128xf32>, vector<3x128xf32> -> vector<3x128xf32>
    %c0_4 = arith.constant 0 : index
    %c0_5 = arith.constant 0 : index
    %4 = vector.load %arg5[%c0_4, %c0_5] : memref<3x1xf32, #tpu.memory_space<vmem>>, vector<3x1xf32>
    %5 = vector.broadcast %4 : vector<3x1xf32> to vector<3x128xf32>
    %6 = arith.addf %3, %5 : vector<3x128xf32>
    %c0_6 = arith.constant 0 : index
    %c0_7 = arith.constant 0 : index
    %c0_8 = arith.constant 0 : index
    %7 = vector.load %arg6[%c0_6, %c0_7, %c0_8] : memref<1x3x128xf32, #tpu.memory_space<vmem>>, vector<1x3x128xf32>
    %8 = vector.shape_cast %7 : vector<1x3x128xf32> to vector<3x128xf32>
    %9 = vector.shape_cast %6 : vector<3x128xf32> to vector<1x3x128xf32>
    tpu.vector_store %arg6[%c0_6, %c0_7, %c0_8], %9 {strides = array<i32>} : memref<1x3x128xf32, #tpu.memory_space<vmem>>, vector<1x3x128xf32>,
    return
  }
  func.func @transform_0(%arg0: i32, %arg1: i32, %arg2: i32) -> (i32, i32, i32) {
    %c0_i32 = arith.constant 0 : i32
    %c0_i32_0 = arith.constant 0 : i32
    return %arg0, %c0_i32, %arg2 : i32, i32, i32
  }
  func.func @transform_1(%arg0: i32, %arg1: i32, %arg2: i32) -> (i32, i32) {
    %c0_i32 = arith.constant 0 : i32
    %c0_i32_0 = arith.constant 0 : i32
    return %arg1, %c0_i32 : i32, i32
  }
  func.func @transform_2(%arg0: i32, %arg1: i32, %arg2: i32) -> (i32, i32) {
    %c0_i32 = arith.constant 0 : i32
    %c0_i32_0 = arith.constant 0 : i32
    return %arg1, %c0_i32 : i32, i32
  }
  func.func @transform_3(%arg0: i32, %arg1: i32, %arg2: i32) -> (i32, i32, i32) {
    %c0_i32 = arith.constant 0 : i32
    return %arg0, %arg1, %arg2 : i32, i32, i32
  }
}

</mosaic_0001>

<bundles_post_ra>
// kernel: _out_conv_call.1
= control target key start
LH: loop header
LB: loop body
LE: loop exit
PB: predicated region body
PF: predicated region fallthrough
CT: control target
= control target key end

     0   :  { %8 = vsyncpa [#allocation3], 0  ;;  %s775_s0 = inlined_call_operand.hbm [shape: f32[2,4,256], index: 0, kind: input, shape index: {}]   ;;  %s776_s1 = inlined_call_operand.vmem [shape: f32[3,4], index: 1, kind: input, shape index: {}]   ;;  %s777_s2 = inlined_call_operand.vmem [shape: f32[3,1], index: 2, kind: input, shape index: {}]   ;;  %s778_s3 = inlined_call_operand.vmem [shape: f32[2,3,256], index: 3, kind: output, shape index: {}]  }
   0x1   :  { %10 = vsyncpa [#allocation3 + $0x1], 0  ;;  %s654_s12 = smov 0   ;;  %s656_s13 = smov 0  }
   0x2   :  { %s658_s14 = smov 0   ;;  %s660_s15 = smov 0  }
   0x3   :  { %s662_s16 = smov 0   ;;  %s664_s17 = smov 0  }
   0x4   :  { %s666_s18 = smov 0   ;;  %s668_s19 = smov 0  }
   0x5 LB: > { %s445_s20 = sadd.s32 4294967295, %s631_s19   ;;  %s28_s21 = sadd.s32 1, %s623_s17  ;;  %s631_s19 = sphi %s668_s19, %s16_s19   ;;  %s627_s18 = sphi %s666_s18, %s787_s18   ;;  %s623_s17 = sphi %s664_s17, %s786_s17   ;;  %s619_s16 = sphi %s662_s16, %s785_s16   ;;  %s615_s15 = sphi %s660_s15, %s784_s15   ;;  %s611_s14 = sphi %s658_s14, %s783_s14   ;;  %s607_s13 = sphi %s656_s13, %s782_s13   ;;  %s603_s12 = sphi %s654_s12, %s781_s12  }
   0x6   : > { %p29_p0 = scmp.ge.s32.totalorder %s28_s21, 2  ;;  %s35_s22 = sadd.s32 1, %s627_s18 }
   0x7   : > { %s44_s23 = sadd.s32 1, %s611_s14  ;;  %p51_p1 = scmp.ne.s32.totalorder %s611_s14, %s607_s13 }
   0x8   : > { %s789_s21 = smov (%p29_p0, %s28_s21), 0  ;;  %s791_s22 = smov (!%p29_p0, %s35_s22), %s627_s18 }
   0x9   : > { %s40_s24 = ssub.s32 %s623_s17, %s789_s21  ;;  %p52_p2 = scmp.eq.s32.totalorder %s631_s19, 0 }
   0xa   : > { %p37_p3 = scmp.ge.s32.totalorder %s791_s22, 2  ;;  %p57_p4 = scmp.ne.s32.totalorder %s607_s13, %s603_s12 }
   0xb   : > { %p705_p5 = por %p52_p2, %p51_p1  ;;  %p58_p6 = scmp.eq.s32.totalorder %s445_s20, 0 }
   0xc   : > { %s793_s22 = smov (%p37_p3, %s791_s22), 0  ;;  %p468_p8 = scmp.lt.s32.totalorder %s631_s19, 4 }
   0xd   : > { %p711_p7 = por %p58_p6, %p57_p4  ;;  %s39_s27 = ssub.s32 %s627_s18, %s793_s22 }
   0xe   : > { %s41_s28 = sor.u32 %s40_s24, %s39_s27  ;;  %s177_s29 = sand.u32 1, %s611_s14  }
   0xf   : > { %p42_p9 = scmp.eq.s32.totalorder %s41_s28, 0  ;;  %s451_s30 = sshll.u32 %s177_s29, 2 }
  0x10   : > { %s452_s4 = sshll.u32 %s627_s18, 1  ;;  %s181_s8 = scalar_lea.vmem [#allocation2], %s451_s30 }
  0x11   : > { %s721_s5 = scalar_select %p42_p9, %s611_s14, %s44_s23  }
  0x12   : > { %s185_s6 = sadd.s32 %s623_s17, %s452_s4  ;;  %s191_s9 = sshll.u32 %s181_s8, 4  ;;  %s192_s9 = int_to_ptr.vmem [resolvable:$true] %s191_s9 }
  0x13   : > { %s453_s7 = sshll.u32 %s185_s6, 2  ;;  %p465_p10 = pnand %p468_p8, %p705_p5 }
  0x14   : > { %s187_s12 = scalar_lea.hbm %s775_s0, %s453_s7  ;;  %p454_p11 = scmp.ge.s32.totalorder %s631_s19, 1 }
  0x15   : > { %s189_s20 = sshll.u32 %s187_s12, 4  ;;  %p196_p12 = scmp.lt.s32.totalorder %s631_s19, 5  ;;  %s190_s20 = int_to_ptr.hbm [resolvable:$true] %s189_s20 }
  0x16   : > { %s178_s24 = scalar_lea.sflag [#allocation3], %s177_s29 }
  0x17   : > { %467 = dma.hbm_to_vmem [thread:$0]  (!%p465_p10), %s190_s20, 64, %s192_s9, %s178_s24  }
  0x18   : > { %p197_p13 = pnand %p454_p11, %p196_p12 }
  0x19   : > { %s202_s23 = sand.u32 (!%p197_p13), 1, %s607_s13  }
  0x1a   : > { %200 = sbr.rel (%p197_p13) target bundleno = 163 (0xa3), region = 32  ;;  %s455_s27 = sshll.u32 (!%p197_p13), %s202_s23, 2 }
  0x1b   : > { %s203_s28 = scalar_lea.sflag (!%p197_p13), [#allocation3], %s202_s23  ;;  %s206_s30 = scalar_lea.vmem (!%p197_p13), [#allocation2], %s455_s27 }
  0x1f   : > { %598 = dma.done.wait (%p711_p7), %s203_s28, 64  }
  0x20   : > { %600 = vsyncadd (%p711_p7), %s203_s28, 4294967232  ;;  %v633_v0 = vmov 0   ;;  %vm277_vm0 = vcmask 1043456   ;;  %vm273_vm1 = vcmask 31744   ;;  %v266_v1 = vld [vmem:[%s206_s30] sm:$0xf] }
  0x21   : > { %534 = vset.pattern.permute.xlu0 %v633_v0  ;;  %v265_v2 = vld [vmem:[%s776_s1] sm:$0x7]  ;;  %458 = vmatpush.msk.msra.mxu0 %vm277_vm0, %v266_v1  ;;  %p253_p0 = scmp.lt.s32.totalorder %s619_s16, 1  ;;  %p257_p1 = scmp.lt.s32.totalorder %s615_s15, 1 }
  0x22   : > { %v267_v3 = vld [vmem:[%s777_s2] sm:$0x7]  ;;  %459 = vmatmul.msk.f32.vlgmr.msra.gmra.mxu0 %vm273_vm1, %v265_v2 }
  0x23   : > { %270 = vperm.xlu0 %534, %v267_v3   ;;  %s795_s16 = smov (!%p253_p0, %s619_s16), 1  ;;  %s797_s15 = smov (!%p257_p1, %s615_s15), 1 }
  0x24   : > { %s456_s26 = sshll.u32 %s795_s16, 1 }
  0x25   : > { %s262_s7 = sadd.s32 %s456_s26, %s797_s15 }
  0x26   : > { %s457_s8 = sshll.u32 %s262_s7, 2 }
  0x27   : > { %s264_s11 = scalar_lea.vmem %s778_s3, %s457_s8 }
  0x95   : > { %v271_v4 = vpop.permute.xlu0 %270 }
  0x9f   : > { %v298_v5 = vpop.f32.mrf.mxu0 }
  0xa0   : > { %v299_v6 = vadd.f32 %v298_v5, %v271_v4 }
  0xa2   : > { %301 = vst [vmem:[%s264_s11] sm:$0x7] %v299_v6 }
  0xa3 PF: > { %s16_s19 = sadd.s32 1, %s631_s19   ;;  %s781_s12 = smov %s607_s13 }
  0xa4   : > { %p13_p2 = scmp.ge.s32.totalorder %s16_s19, 6   ;;  %s782_s13 = smov %s611_s14 }
  0xa5   : > { %s783_s14 = smov %s721_s5  ;;  %s784_s15 = smov %s623_s17 }
  0xa6   : > { %s785_s16 = smov %s627_s18  ;;  %s786_s17 = smov %s789_s21 }
  0xa7   : > { %s787_s18 = smov %s793_s22  ;;  %15 = sbr.rel (!%p13_p2) target bundleno = 5 (0x5), region = 78 }
  0xac   :  { %337 = vsyncpa [#allocation3], 1 }
  0xad   :  { %339 = vsyncpa [#allocation3 + $0x1], 1 }

</bundles_post_ra>
